<compile_context>
chip_gen: v7x
topology: tpu7x:2x2x1
jax: 0.10.0
libtpu: 0.0.40
codegen_flags: <defaults>
</compile_context>

<pallas_src>
import math

import jax
import jax.numpy as jnp
from jax import lax
from jax.experimental import pallas as pl
from jax.experimental.pallas import tpu as pltpu

N_HEAD = 4
LN_EPS = 1e-5


def _layernorm(x, gamma, beta):
    mu = jnp.mean(x, axis=-1, keepdims=True)
    var = jnp.mean((x - mu) ** 2, axis=-1, keepdims=True)
    return (x - mu) * lax.rsqrt(var + LN_EPS) * gamma + beta


def _prep_params(params, C):
    """Wrapper-side (free) weight prep: fold the attention scale into the Q
    columns of the fused qkv weight/bias (in f32, before the bf16 cast) and
    cast matmul weights to bf16.  Biases and LN params stay f32."""
    hd = C // N_HEAD
    scale = 1.0 / math.sqrt(hd)
    (g1, b1, wqkv, bqkv, wap, bap, g2, b2, wfc, bfc, wmp, bmp) = params

    col_scale = jnp.concatenate(
        [jnp.full((C,), scale, jnp.float32),
         jnp.ones((2 * C,), jnp.float32)])[None, :]          # (1, 3C)

    wqkv_s = (wqkv * col_scale).astype(jnp.bfloat16)          # (C, 3C)
    bqkv_s = (bqkv * col_scale).astype(jnp.float32)           # (1, 3C)

    return (g1, b1, wqkv_s, bqkv_s,
            wap.astype(jnp.bfloat16), bap,
            g2, b2,
            wfc.astype(jnp.bfloat16), bfc,
            wmp.astype(jnp.bfloat16), bmp)


def gpt2_block(x, params):
    B, T, C = x.shape
    hd = C // N_HEAD
    N = B * T            # rows seen by every dense matmul (batch folded into M)
    G = N_HEAD * B       # fused (head, batch) axis for attention

    kparams = _prep_params(params, C)
    x2d = x.reshape(N, C)                      # free, wrapper-side

    def kernel(x_ref, g1_ref, b1_ref, wqkv_ref, bqkv_ref, wap_ref, bap_ref,
               g2_ref, b2_ref, wfc_ref, bfc_ref, wmp_ref, bmp_ref, o_ref):
        xv = x_ref[...]                                            # (N, C) f32

        # ---------- attention branch: x + attn(ln_1(x)) ----------
        h = _layernorm(xv, g1_ref[...], b1_ref[...])

        # Single fused QKV matmul: 96 live output lanes, one MXU push.
        # 1/sqrt(hd) is already folded into the Q columns of wqkv/bqkv.
        qkv = jnp.dot(h.astype(jnp.bfloat16), wqkv_ref[...],
                      preferred_element_type=jnp.float32) + bqkv_ref[...]

        def split_heads(off):
            # static lane slices -> (N_HEAD, N, hd) -> (G, T, hd); the reshape
            # only splits/merges sublane-side dims (last dim untouched).
            parts = [qkv[:, off + hh * hd: off + (hh + 1) * hd]
                     for hh in range(N_HEAD)]
            return jnp.stack(parts, axis=0).reshape(G, T, hd).astype(jnp.bfloat16)

        qg = split_heads(0)          # g = head * B + batch
        kg = split_heads(C)
        vg = split_heads(2 * C)

        # additive causal mask, computed once, shared by every (head, batch);
        # -1e30 is safe because scores accumulate in f32.
        row = lax.broadcasted_iota(jnp.int32, (T, T), 0)
        col = lax.broadcasted_iota(jnp.int32, (T, T), 1)
        causal_bias = jnp.where(col <= row, 0.0, -1e30).astype(jnp.float32)

        s = jnp.einsum('gtd,gsd->gts', qg, kg,
                       preferred_element_type=jnp.float32)         # (G, T, T)
        s = s + causal_bias
        s = s - jnp.max(s, axis=-1, keepdims=True)
        p = jnp.exp(s)
        p = p * pl.reciprocal(jnp.sum(p, axis=-1, keepdims=True), approx=True)
        o = jnp.einsum('gts,gsd->gtd', p.astype(jnp.bfloat16), vg,
                       preferred_element_type=jnp.float32)         # (G, T, hd)

        # Repack heads -> lanes once: (G,T,hd), g=h*B+b  ->  (N, C) with
        # row n=b*T+t and lane h*hd+d, then one lane-dense dot against c_proj.
        o3 = o.reshape(N_HEAD, N, hd)
        o_nc = jnp.concatenate([o3[hh] for hh in range(N_HEAD)], axis=-1)
        y = jnp.dot(o_nc.astype(jnp.bfloat16), wap_ref[...],
                    preferred_element_type=jnp.float32) + bap_ref[...]
        x1 = xv + y

        # ---------- MLP branch: x1 + mlp(ln_2(x1)) ----------
        h2 = _layernorm(x1, g2_ref[...], b2_ref[...])
        f = jnp.dot(h2.astype(jnp.bfloat16), wfc_ref[...],
                    preferred_element_type=jnp.float32) + bfc_ref[...]
        cst = math.sqrt(2.0 / math.pi)             # GELU, approximate='tanh'
        g = 0.5 * f * (1.0 + jnp.tanh(cst * (f + 0.044715 * f * f * f)))
        m = jnp.dot(g.astype(jnp.bfloat16), wmp_ref[...],
                    preferred_element_type=jnp.float32) + bmp_ref[...]

        o_ref[...] = x1 + m

    vmem_spec = pl.BlockSpec(memory_space=pltpu.MemorySpace.VMEM)

    # No grid: everything is tiny and lives fully in VMEM; a 1-step grid would
    # only add pipelining bookkeeping.
    out = pl.pallas_call(
        kernel,
        out_shape=jax.ShapeDtypeStruct((N, C), jnp.float32),
        in_specs=[vmem_spec] * (1 + len(kparams)),
        out_specs=vmem_spec,
    )(x2d, *kparams)
    return out.reshape(B, T, C)


def init_params(key, C):
    ks = jax.random.split(key, 8)
    std = 0.02
    g1 = jnp.ones((1, C), jnp.float32)
    b1 = jnp.zeros((1, C), jnp.float32)
    wqkv = std * jax.random.normal(ks[0], (C, 3 * C), dtype=jnp.float32)
    bqkv = std * jax.random.normal(ks[1], (1, 3 * C), dtype=jnp.float32)
    wap = std * jax.random.normal(ks[2], (C, C), dtype=jnp.float32)
    bap = std * jax.random.normal(ks[3], (1, C), dtype=jnp.float32)
    g2 = jnp.ones((1, C), jnp.float32)
    b2 = jnp.zeros((1, C), jnp.float32)
    wfc = std * jax.random.normal(ks[4], (C, 4 * C), dtype=jnp.float32)
    bfc = std * jax.random.normal(ks[5], (1, 4 * C), dtype=jnp.float32)
    wmp = std * jax.random.normal(ks[6], (4 * C, C), dtype=jnp.float32)
    bmp = std * jax.random.normal(ks[7], (1, C), dtype=jnp.float32)
    return (g1, b1, wqkv, bqkv, wap, bap, g2, b2, wfc, bfc, wmp, bmp)


def ref_block(x, params):
    """Pure-JAX f32 reference mirroring the PyTorch Block forward."""
    g1, b1, wqkv, bqkv, wap, bap, g2, b2, wfc, bfc, wmp, bmp = params

    def ln(z, g, b):
        mu = z.mean(-1, keepdims=True)
        var = ((z - mu) ** 2).mean(-1, keepdims=True)
        return (z - mu) / jnp.sqrt(var + LN_EPS) * g + b

    B, T, C = x.shape
    hd = C // N_HEAD
    h = ln(x, g1, b1)
    qkv = h @ wqkv + bqkv
    q, k, v = jnp.split(qkv, 3, axis=-1)

    def heads(t):
        return t.reshape(B, T, N_HEAD, hd).transpose(0, 2, 1, 3)

    q, k, v = heads(q), heads(k), heads(v)
    s = jnp.einsum('bhqd,bhkd->bhqk', q, k) / math.sqrt(hd)
    mask = jnp.tril(jnp.ones((T, T), bool))
    s = jnp.where(mask, s, -1e30)
    p = jax.nn.softmax(s, axis=-1)
    y = jnp.einsum('bhqk,bhkd->bhqd', p, v).transpose(0, 2, 1, 3).reshape(B, T, C)
    x1 = x + y @ wap + bap
    h2 = ln(x1, g2, b2)
    f = h2 @ wfc + bfc
    g = 0.5 * f * (1.0 + jnp.tanh(math.sqrt(2.0 / math.pi) * (f + 0.044715 * f ** 3)))
    return x1 + g @ wmp + bmp


if __name__ == "__main__":
    B, T, C = 2, 8, 32          # batch, seq, n_embd; n_head = 4, head_dim = 8
    key = jax.random.PRNGKey(0)
    kx, kp = jax.random.split(key)
    x = jax.random.normal(kx, (B, T, C), dtype=jnp.float32)
    params = init_params(kp, C)

    out = jax.block_until_ready(gpt2_block(x, params))
    ref = jax.block_until_ready(ref_block(x, params))

    assert out.shape == (B, T, C)
    # bf16 MXU operands + approx reciprocal => slightly looser tolerance vs f32 ref
    assert jnp.allclose(out, ref, rtol=2e-3, atol=2e-3), \
        f"max abs err {jnp.max(jnp.abs(out - ref))}"
    print("KERNEL_OK")
</pallas_src>

<mosaic_0001>
module attributes {stable_mosaic.version = 11 : i64} {
  func.func @kernel(%arg0: memref<16x32xf32, #tpu.memory_space<vmem>>, %arg1: memref<1x32xf32, #tpu.memory_space<vmem>>, %arg2: memref<1x32xf32, #tpu.memory_space<vmem>>, %arg3: memref<32x96xbf16, #tpu.memory_space<vmem>>, %arg4: memref<1x96xf32, #tpu.memory_space<vmem>>, %arg5: memref<32x32xbf16, #tpu.memory_space<vmem>>, %arg6: memref<1x32xf32, #tpu.memory_space<vmem>>, %arg7: memref<1x32xf32, #tpu.memory_space<vmem>>, %arg8: memref<1x32xf32, #tpu.memory_space<vmem>>, %arg9: memref<32x128xbf16, #tpu.memory_space<vmem>>, %arg10: memref<1x128xf32, #tpu.memory_space<vmem>>, %arg11: memref<128x32xbf16, #tpu.memory_space<vmem>>, %arg12: memref<1x32xf32, #tpu.memory_space<vmem>>, %arg13: memref<16x32xf32, #tpu.memory_space<vmem>>) attributes {dimension_semantics = [], scalar_prefetch = 0 : i64, scratch_operands = 0 : i64, tpu.core_type = #tpu.core_type<tc>} {
    %c0 = arith.constant 0 : index
    %c0_0 = arith.constant 0 : index
    %0 = vector.load %arg0[%c0, %c0_0] : memref<16x32xf32, #tpu.memory_space<vmem>>, vector<16x32xf32>
    %c0_1 = arith.constant 0 : index
    %c0_2 = arith.constant 0 : index
    %1 = vector.load %arg1[%c0_1, %c0_2] : memref<1x32xf32, #tpu.memory_space<vmem>>, vector<1x32xf32>
    %c0_3 = arith.constant 0 : index
    %c0_4 = arith.constant 0 : index
    %2 = vector.load %arg2[%c0_3, %c0_4] : memref<1x32xf32, #tpu.memory_space<vmem>>, vector<1x32xf32>
    %cst = arith.constant dense<0.000000e+00> : vector<16xf32>
    %3 = vector.multi_reduction <add>, %0, %cst [1] : vector<16x32xf32> to vector<16xf32>
    %4 = vector.shape_cast %3 : vector<16xf32> to vector<16x1xf32>
    %cst_5 = arith.constant 3.200000e+01 : f32
    %5 = vector.broadcast %cst_5 : f32 to vector<16x1xf32>
    %6 = arith.divf %4, %5 : vector<16x1xf32>
    %7 = vector.broadcast %6 : vector<16x1xf32> to vector<16x32xf32>
    %8 = arith.subf %0, %7 : vector<16x32xf32>
    %9 = arith.mulf %8, %8 : vector<16x32xf32>
    %cst_6 = arith.constant dense<0.000000e+00> : vector<16xf32>
    %10 = vector.multi_reduction <add>, %9, %cst_6 [1] : vector<16x32xf32> to vector<16xf32>
    %11 = vector.shape_cast %10 : vector<16xf32> to vector<16x1xf32>
    %cst_7 = arith.constant 3.200000e+01 : f32
    %12 = vector.broadcast %cst_7 : f32 to vector<16x1xf32>
    %13 = arith.divf %11, %12 : vector<16x1xf32>
    %14 = vector.broadcast %6 : vector<16x1xf32> to vector<16x32xf32>
    %15 = arith.subf %0, %14 : vector<16x32xf32>
    %cst_8 = arith.constant 9.99999974E-6 : f32
    %16 = vector.broadcast %cst_8 : f32 to vector<16x1xf32>
    %17 = arith.addf %13, %16 : vector<16x1xf32>
    %18 = math.rsqrt %17 : vector<16x1xf32>
    %19 = vector.broadcast %18 : vector<16x1xf32> to vector<16x32xf32>
    %20 = arith.mulf %15, %19 : vector<16x32xf32>
    %21 = vector.broadcast %1 : vector<1x32xf32> to vector<16x32xf32>
    %22 = arith.mulf %20, %21 : vector<16x32xf32>
    %23 = vector.broadcast %2 : vector<1x32xf32> to vector<16x32xf32>
    %24 = arith.addf %22, %23 : vector<16x32xf32>
    %25 = arith.truncf %24 : vector<16x32xf32> to vector<16x32xbf16>
    %c0_9 = arith.constant 0 : index
    %c0_10 = arith.constant 0 : index
    %26 = vector.load %arg3[%c0_9, %c0_10] : memref<32x96xbf16, #tpu.memory_space<vmem>>, vector<32x96xbf16>
    %cst_11 = arith.constant dense<0.000000e+00> : vector<16x96xf32>
    %27 = tpu.matmul %25, %26, %cst_11 {dimension_numbers = #tpu.dot_dimension_numbers<[1], [0], [0], [1], [0, 0, 1, 1], [], []>} : vector<16x32xbf16>, vector<32x96xbf16>, vector<16x96xf32> -> vector<16x96xf32>
    %c0_12 = arith.constant 0 : index
    %c0_13 = arith.constant 0 : index
    %28 = vector.load %arg4[%c0_12, %c0_13] : memref<1x96xf32, #tpu.memory_space<vmem>>, vector<1x96xf32>
    %29 = vector.broadcast %28 : vector<1x96xf32> to vector<16x96xf32>
    %30 = arith.addf %27, %29 : vector<16x96xf32>
    %31 = vector.extract_strided_slice %30 {offsets = [0, 0], sizes = [16, 8], strides = [1, 1]} : vector<16x96xf32> to vector<16x8xf32>
    %32 = vector.extract_strided_slice %30 {offsets = [0, 8], sizes = [16, 8], strides = [1, 1]} : vector<16x96xf32> to vector<16x8xf32>
    %33 = vector.extract_strided_slice %30 {offsets = [0, 16], sizes = [16, 8], strides = [1, 1]} : vector<16x96xf32> to vector<16x8xf32>
    %34 = vector.extract_strided_slice %30 {offsets = [0, 24], sizes = [16, 8], strides = [1, 1]} : vector<16x96xf32> to vector<16x8xf32>
    %35 = vector.shape_cast %31 : vector<16x8xf32> to vector<1x16x8xf32>
    %36 = vector.shape_cast %32 : vector<16x8xf32> to vector<1x16x8xf32>
    %37 = vector.shape_cast %33 : vector<16x8xf32> to vector<1x16x8xf32>
    %38 = vector.shape_cast %34 : vector<16x8xf32> to vector<1x16x8xf32>
    %39 = tpu.concatenate %35, %36, %37, %38 in 0 : vector<1x16x8xf32>, vector<1x16x8xf32>, vector<1x16x8xf32>, vector<1x16x8xf32> -> vector<4x16x8xf32>
    %40 = vector.shape_cast %39 : vector<4x16x8xf32> to vector<8x8x8xf32>
    %41 = arith.truncf %40 : vector<8x8x8xf32> to vector<8x8x8xbf16>
    %42 = vector.extract_strided_slice %30 {offsets = [0, 32], sizes = [16, 8], strides = [1, 1]} : vector<16x96xf32> to vector<16x8xf32>
    %43 = vector.extract_strided_slice %30 {offsets = [0, 40], sizes = [16, 8], strides = [1, 1]} : vector<16x96xf32> to vector<16x8xf32>
    %44 = vector.extract_strided_slice %30 {offsets = [0, 48], sizes = [16, 8], strides = [1, 1]} : vector<16x96xf32> to vector<16x8xf32>
    %45 = vector.extract_strided_slice %30 {offsets = [0, 56], sizes = [16, 8], strides = [1, 1]} : vector<16x96xf32> to vector<16x8xf32>
    %46 = vector.shape_cast %42 : vector<16x8xf32> to vector<1x16x8xf32>
    %47 = vector.shape_cast %43 : vector<16x8xf32> to vector<1x16x8xf32>
    %48 = vector.shape_cast %44 : vector<16x8xf32> to vector<1x16x8xf32>
    %49 = vector.shape_cast %45 : vector<16x8xf32> to vector<1x16x8xf32>
    %50 = tpu.concatenate %46, %47, %48, %49 in 0 : vector<1x16x8xf32>, vector<1x16x8xf32>, vector<1x16x8xf32>, vector<1x16x8xf32> -> vector<4x16x8xf32>
    %51 = vector.shape_cast %50 : vector<4x16x8xf32> to vector<8x8x8xf32>
    %52 = arith.truncf %51 : vector<8x8x8xf32> to vector<8x8x8xbf16>
    %53 = vector.extract_strided_slice %30 {offsets = [0, 64], sizes = [16, 8], strides = [1, 1]} : vector<16x96xf32> to vector<16x8xf32>
    %54 = vector.extract_strided_slice %30 {offsets = [0, 72], sizes = [16, 8], strides = [1, 1]} : vector<16x96xf32> to vector<16x8xf32>
    %55 = vector.extract_strided_slice %30 {offsets = [0, 80], sizes = [16, 8], strides = [1, 1]} : vector<16x96xf32> to vector<16x8xf32>
    %56 = vector.extract_strided_slice %30 {offsets = [0, 88], sizes = [16, 8], strides = [1, 1]} : vector<16x96xf32> to vector<16x8xf32>
    %57 = vector.shape_cast %53 : vector<16x8xf32> to vector<1x16x8xf32>
    %58 = vector.shape_cast %54 : vector<16x8xf32> to vector<1x16x8xf32>
    %59 = vector.shape_cast %55 : vector<16x8xf32> to vector<1x16x8xf32>
    %60 = vector.shape_cast %56 : vector<16x8xf32> to vector<1x16x8xf32>
    %61 = tpu.concatenate %57, %58, %59, %60 in 0 : vector<1x16x8xf32>, vector<1x16x8xf32>, vector<1x16x8xf32>, vector<1x16x8xf32> -> vector<4x16x8xf32>
    %62 = vector.shape_cast %61 : vector<4x16x8xf32> to vector<8x8x8xf32>
    %63 = arith.truncf %62 : vector<8x8x8xf32> to vector<8x8x8xbf16>
    %64 = tpu.iota {dimensions = array<i32: 0>} : vector<8x8xi32>
    %65 = tpu.iota {dimensions = array<i32: 1>} : vector<8x8xi32>
    %66 = arith.cmpi sle, %65, %64 : vector<8x8xi32>
    %cst_14 = arith.constant 0.000000e+00 : f32
    %cst_15 = arith.constant -1.000000e+30 : f32
    %67 = vector.broadcast %cst_14 : f32 to vector<8x8xf32>
    %68 = vector.broadcast %cst_15 : f32 to vector<8x8xf32>
    %69 = arith.select %66, %67, %68 : vector<8x8xi1>, vector<8x8xf32>
    "tpu.trace_start"() <{level = 10 : i32, message = "gtd,gsd->gts"}> : () -> ()
    %cst_16 = arith.constant dense<0.000000e+00> : vector<8x8x8xf32>
    %70 = tpu.matmul %41, %52, %cst_16 {dimension_numbers = #tpu.dot_dimension_numbers<[2], [2], [1], [1], [0, 0, 0, 1, 1, 1], [0], [0]>} : vector<8x8x8xbf16>, vector<8x8x8xbf16>, vector<8x8x8xf32> -> vector<8x8x8xf32>
    "tpu.trace_stop"() : () -> ()
    %71 = vector.shape_cast %69 : vector<8x8xf32> to vector<1x8x8xf32>
    %72 = vector.broadcast %71 : vector<1x8x8xf32> to vector<8x8x8xf32>
    %73 = arith.addf %70, %72 : vector<8x8x8xf32>
    %cst_17 = arith.constant dense<0xFF800000> : vector<8x8xf32>
    %74 = vector.multi_reduction <maximumf>, %73, %cst_17 [2] : vector<8x8x8xf32> to vector<8x8xf32>
    %75 = vector.shape_cast %74 : vector<8x8xf32> to vector<8x8x1xf32>
    %76 = vector.broadcast %75 : vector<8x8x1xf32> to vector<8x8x8xf32>
    %77 = arith.subf %73, %76 : vector<8x8x8xf32>
    %78 = math.exp %77 : vector<8x8x8xf32>
    %cst_18 = arith.constant dense<0.000000e+00> : vector<8x8xf32>
    %79 = vector.multi_reduction <add>, %78, %cst_18 [2] : vector<8x8x8xf32> to vector<8x8xf32>
    %80 = vector.shape_cast %79 : vector<8x8xf32> to vector<8x8x1xf32>
    %81 = tpu.reciprocal %80 {approx = true} : vector<8x8x1xf32> -> vector<8x8x1xf32>
    %82 = vector.broadcast %81 : vector<8x8x1xf32> to vector<8x8x8xf32>
    %83 = arith.mulf %78, %82 : vector<8x8x8xf32>
    %84 = arith.truncf %83 : vector<8x8x8xf32> to vector<8x8x8xbf16>
    "tpu.trace_start"() <{level = 10 : i32, message = "gts,gsd->gtd"}> : () -> ()
    %cst_19 = arith.constant dense<0.000000e+00> : vector<8x8x8xf32>
    %85 = tpu.matmul %84, %63, %cst_19 {dimension_numbers = #tpu.dot_dimension_numbers<[2], [1], [1], [2], [0, 0, 0, 1, 1, 2], [0], [0]>} : vector<8x8x8xbf16>, vector<8x8x8xbf16>, vector<8x8x8xf32> -> vector<8x8x8xf32>
    "tpu.trace_stop"() : () -> ()
    %86 = vector.shape_cast %85 : vector<8x8x8xf32> to vector<4x16x8xf32>
    %87 = vector.extract_strided_slice %86 {offsets = [0, 0, 0], sizes = [1, 16, 8], strides = [1, 1, 1]} : vector<4x16x8xf32> to vector<1x16x8xf32>
    %88 = vector.shape_cast %87 : vector<1x16x8xf32> to vector<16x8xf32>
    %89 = vector.extract_strided_slice %86 {offsets = [1, 0, 0], sizes = [1, 16, 8], strides = [1, 1, 1]} : vector<4x16x8xf32> to vector<1x16x8xf32>
    %90 = vector.shape_cast %89 : vector<1x16x8xf32> to vector<16x8xf32>
    %91 = vector.extract_strided_slice %86 {offsets = [2, 0, 0], sizes = [1, 16, 8], strides = [1, 1, 1]} : vector<4x16x8xf32> to vector<1x16x8xf32>
    %92 = vector.shape_cast %91 : vector<1x16x8xf32> to vector<16x8xf32>
    %93 = vector.extract_strided_slice %86 {offsets = [3, 0, 0], sizes = [1, 16, 8], strides = [1, 1, 1]} : vector<4x16x8xf32> to vector<1x16x8xf32>
    %94 = vector.shape_cast %93 : vector<1x16x8xf32> to vector<16x8xf32>
    %95 = tpu.concatenate %88, %90, %92, %94 in 1 : vector<16x8xf32>, vector<16x8xf32>, vector<16x8xf32>, vector<16x8xf32> -> vector<16x32xf32>
    %96 = arith.truncf %95 : vector<16x32xf32> to vector<16x32xbf16>
    %c0_20 = arith.constant 0 : index
    %c0_21 = arith.constant 0 : index
    %97 = vector.load %arg5[%c0_20, %c0_21] : memref<32x32xbf16, #tpu.memory_space<vmem>>, vector<32x32xbf16>
    %cst_22 = arith.constant dense<0.000000e+00> : vector<16x32xf32>
    %98 = tpu.matmul %96, %97, %cst_22 {dimension_numbers = #tpu.dot_dimension_numbers<[1], [0], [0], [1], [0, 0, 1, 1], [], []>} : vector<16x32xbf16>, vector<32x32xbf16>, vector<16x32xf32> -> vector<16x32xf32>
    %c0_23 = arith.constant 0 : index
    %c0_24 = arith.constant 0 : index
    %99 = vector.load %arg6[%c0_23, %c0_24] : memref<1x32xf32, #tpu.memory_space<vmem>>, vector<1x32xf32>
    %100 = vector.broadcast %99 : vector<1x32xf32> to vector<16x32xf32>
    %101 = arith.addf %98, %100 : vector<16x32xf32>
    %102 = arith.addf %0, %101 : vector<16x32xf32>
    %c0_25 = arith.constant 0 : index
    %c0_26 = arith.constant 0 : index
    %103 = vector.load %arg7[%c0_25, %c0_26] : memref<1x32xf32, #tpu.memory_space<vmem>>, vector<1x32xf32>
    %c0_27 = arith.constant 0 : index
    %c0_28 = arith.constant 0 : index
    %104 = vector.load %arg8[%c0_27, %c0_28] : memref<1x32xf32, #tpu.memory_space<vmem>>, vector<1x32xf32>
    %cst_29 = arith.constant dense<0.000000e+00> : vector<16xf32>
    %105 = vector.multi_reduction <add>, %102, %cst_29 [1] : vector<16x32xf32> to vector<16xf32>
    %106 = vector.shape_cast %105 : vector<16xf32> to vector<16x1xf32>
    %cst_30 = arith.constant 3.200000e+01 : f32
    %107 = vector.broadcast %cst_30 : f32 to vector<16x1xf32>
    %108 = arith.divf %106, %107 : vector<16x1xf32>
    %109 = vector.broadcast %108 : vector<16x1xf32> to vector<16x32xf32>
    %110 = arith.subf %102, %109 : vector<16x32xf32>
    %111 = arith.mulf %110, %110 : vector<16x32xf32>
    %cst_31 = arith.constant dense<0.000000e+00> : vector<16xf32>
    %112 = vector.multi_reduction <add>, %111, %cst_31 [1] : vector<16x32xf32> to vector<16xf32>
    %113 = vector.shape_cast %112 : vector<16xf32> to vector<16x1xf32>
    %cst_32 = arith.constant 3.200000e+01 : f32
    %114 = vector.broadcast %cst_32 : f32 to vector<16x1xf32>
    %115 = arith.divf %113, %114 : vector<16x1xf32>
    %116 = vector.broadcast %108 : vector<16x1xf32> to vector<16x32xf32>
    %117 = arith.subf %102, %116 : vector<16x32xf32>
    %cst_33 = arith.constant 9.99999974E-6 : f32
    %118 = vector.broadcast %cst_33 : f32 to vector<16x1xf32>
    %119 = arith.addf %115, %118 : vector<16x1xf32>
    %120 = math.rsqrt %119 : vector<16x1xf32>
    %121 = vector.broadcast %120 : vector<16x1xf32> to vector<16x32xf32>
    %122 = arith.mulf %117, %121 : vector<16x32xf32>
    %123 = vector.broadcast %103 : vector<1x32xf32> to vector<16x32xf32>
    %124 = arith.mulf %122, %123 : vector<16x32xf32>
    %125 = vector.broadcast %104 : vector<1x32xf32> to vector<16x32xf32>
    %126 = arith.addf %124, %125 : vector<16x32xf32>
    %127 = arith.truncf %126 : vector<16x32xf32> to vector<16x32xbf16>
    %c0_34 = arith.constant 0 : index
    %c0_35 = arith.constant 0 : index
    %128 = vector.load %arg9[%c0_34, %c0_35] : memref<32x128xbf16, #tpu.memory_space<vmem>>, vector<32x128xbf16>
    %cst_36 = arith.constant dense<0.000000e+00> : vector<16x128xf32>
    %129 = tpu.matmul %127, %128, %cst_36 {dimension_numbers = #tpu.dot_dimension_numbers<[1], [0], [0], [1], [0, 0, 1, 1], [], []>} : vector<16x32xbf16>, vector<32x128xbf16>, vector<16x128xf32> -> vector<16x128xf32>
    %c0_37 = arith.constant 0 : index
    %c0_38 = arith.constant 0 : index
    %130 = vector.load %arg10[%c0_37, %c0_38] : memref<1x128xf32, #tpu.memory_space<vmem>>, vector<1x128xf32>
    %131 = vector.broadcast %130 : vector<1x128xf32> to vector<16x128xf32>
    %132 = arith.addf %129, %131 : vector<16x128xf32>
    %cst_39 = arith.constant 5.000000e-01 : f32
    %133 = vector.broadcast %cst_39 : f32 to vector<16x128xf32>
    %134 = arith.mulf %133, %132 : vector<16x128xf32>
    %cst_40 = arith.constant 4.471500e-02 : f32
    %135 = vector.broadcast %cst_40 : f32 to vector<16x128xf32>
    %136 = arith.mulf %135, %132 : vector<16x128xf32>
    %137 = arith.mulf %136, %132 : vector<16x128xf32>
    %138 = arith.mulf %137, %132 : vector<16x128xf32>
    %139 = arith.addf %132, %138 : vector<16x128xf32>
    %cst_41 = arith.constant 0.797884583 : f32
    %140 = vector.broadcast %cst_41 : f32 to vector<16x128xf32>
    %141 = arith.mulf %140, %139 : vector<16x128xf32>
    %142 = math.tanh %141 : vector<16x128xf32>
    %cst_42 = arith.constant 1.000000e+00 : f32
    %143 = vector.broadcast %cst_42 : f32 to vector<16x128xf32>
    %144 = arith.addf %143, %142 : vector<16x128xf32>
    %145 = arith.mulf %134, %144 : vector<16x128xf32>
    %146 = arith.truncf %145 : vector<16x128xf32> to vector<16x128xbf16>
    %c0_43 = arith.constant 0 : index
    %c0_44 = arith.constant 0 : index
    %147 = vector.load %arg11[%c0_43, %c0_44] : memref<128x32xbf16, #tpu.memory_space<vmem>>, vector<128x32xbf16>
    %cst_45 = arith.constant dense<0.000000e+00> : vector<16x32xf32>
    %148 = tpu.matmul %146, %147, %cst_45 {dimension_numbers = #tpu.dot_dimension_numbers<[1], [0], [0], [1], [0, 0, 1, 1], [], []>} : vector<16x128xbf16>, vector<128x32xbf16>, vector<16x32xf32> -> vector<16x32xf32>
    %c0_46 = arith.constant 0 : index
    %c0_47 = arith.constant 0 : index
    %149 = vector.load %arg12[%c0_46, %c0_47] : memref<1x32xf32, #tpu.memory_space<vmem>>, vector<1x32xf32>
    %150 = vector.broadcast %149 : vector<1x32xf32> to vector<16x32xf32>
    %151 = arith.addf %148, %150 : vector<16x32xf32>
    %152 = arith.addf %102, %151 : vector<16x32xf32>
    %c0_48 = arith.constant 0 : index
    %c0_49 = arith.constant 0 : index
    %153 = vector.load %arg13[%c0_48, %c0_49] : memref<16x32xf32, #tpu.memory_space<vmem>>, vector<16x32xf32>
    tpu.vector_store %arg13[%c0_48, %c0_49], %152 {strides = array<i32>} : memref<16x32xf32, #tpu.memory_space<vmem>>, vector<16x32xf32>,
    return
  }
}

</mosaic_0001>

<bundles_post_ra>
// kernel: tpu_custom_call.1
= control target key start
LH: loop header
LB: loop body
LE: loop exit
PB: predicated region body
PF: predicated region fallthrough
CT: control target
= control target key end

     0   :  { %vm50_vm0 = vcmask 261120   ;;  %s2196_s0 = inlined_call_operand.vmem [shape: f32[16,32], index: 0, kind: input, shape index: {}]   ;;  %s2197_s1 = inlined_call_operand.vmem [shape: f32[1,32], index: 1, kind: input, shape index: {}]   ;;  %s2198_s2 = inlined_call_operand.vmem [shape: f32[1,32], index: 2, kind: input, shape index: {}]   ;;  %s2199_s3 = inlined_call_operand.vmem [shape: bf16[32,96], index: 3, kind: input, shape index: {}]   ;;  %s2200_s4 = inlined_call_operand.vmem [shape: f32[1,96], index: 4, kind: input, shape index: {}]   ;;  %s2201_s5 = inlined_call_operand.vmem [shape: bf16[32,32], index: 5, kind: input, shape index: {}]   ;;  %s2202_s6 = inlined_call_operand.vmem [shape: f32[1,32], index: 6, kind: input, shape index: {}]   ;;  %s2203_s7 = inlined_call_operand.vmem [shape: f32[1,32], index: 7, kind: input, shape index: {}]   ;;  %s2204_s8 = inlined_call_operand.vmem [shape: f32[1,32], index: 8, kind: input, shape index: {}]   ;;  %s2205_s9 = inlined_call_operand.vmem [shape: bf16[32,128], index: 9, kind: input, shape index: {}]   ;;  %s2206_s10 = inlined_call_operand.vmem [shape: f32[1,128], index: 10, kind: input, shape index: {}]   ;;  %s2207_s11 = inlined_call_operand.vmem [shape: bf16[128,32], index: 11, kind: input, shape index: {}]   ;;  %s2208_s12 = inlined_call_operand.vmem [shape: f32[1,32], index: 12, kind: input, shape index: {}]   ;;  %s2209_s13 = inlined_call_operand.hbm [shape: f32[16,32], index: 13, kind: output, shape index: {}]  }
   0x1   :  { %v1877_v0 = vld [vmem:[%s2196_s0] sm:$0xff]  ;;  %v1882_v1 = vld [vmem:[%s2196_s0 + $0x8] sm:$0xff] }
   0x2   :  { %v51_v2 = vsel %vm50_vm0, %v1877_v0, 0.0  ;;  %v54_v3 = vsel %vm50_vm0, %v1882_v1, 0.0 }
   0x3   :  { %52 = vadd.xlane.f32.xlu0 %v51_v2 }
   0x7   :  { %55 = vadd.xlane.f32.xlu0 %v54_v3 }
   0x8   :  { %18 = vsyncpa [#allocation3], 0  ;;  %v1709_v14 = vld [vmem:[%s2199_s3] sm:$0xff]   ;;  %v1791_v15 = vmov 0.0   ;;  %v1710_v16 = vld [vmem:[%s2199_s3 + $0x8] sm:$0xff]   ;;  %vm1792_vm1 = vmmov 0  }
   0x9   :  { %1526 = vmatprep.subr.bf16.mxu0 %v1791_v15  ;;  %1546 = vmatprep.subr.bf16.mxu1 %v1791_v15  ;;  %v1435_v25 = vld [vmem:[%s2197_s1] ss:$0 sm:$0xff]  ;;  %s1793_s1 = smov 112   ;;  %s1795_s20 = smov 104   ;;  %vm199_vm2 = vcmask 64512   ;;  %vm690_vm3 = vcmask 1043456  }
   0xa   :  { %1527 = vmatpush3.bf16.msra.mxu0 %v1709_v14  ;;  %1530 = vmatprep.mubr.msk.bf16.mxu0 %vm1792_vm1, %v1791_v15  ;;  %v1436_v29 = vld [vmem:[%s2198_s2] ss:$0 sm:$0xff]  ;;  %s1794_s2 = smov 120   ;;  %s1796_s21 = smov 96   ;;  %vm1096_vm5 = vcmask 130048   ;;  %vm1099_vm6 = vcmask 195584  }
   0xb   :  { %1528 = vmatprep.subr.bf16.mxu0 %v1791_v15  ;;  %1548 = vmatprep.mubr.msk.bf16.mxu1 %vm1792_vm1, %v1791_v15  ;;  %v1437_v34 = vld [vmem:[%s2200_s4] ss:$0 sm:$0xff]  ;;  %s1797_s4 = smov 64   ;;  %s1799_s22 = smov 8  }
   0xc   :  { %s1800_s27 = smov 16   ;;  %s1801_s28 = smov 24  }
   0xe   :  { %1529 = vmatpush3.bf16.msra.mxu0 %v1710_v16  ;;  %v190_v16 = vlaneseq }
   0xf   :  { %1534 = vmatprep.subr.bf16.mxu0 %v1791_v15 }
  0x90   :  { %v53_v4 = vpop.xlane.xlu0 %52 }
  0x91   :  { %v58_v5 = vmul.f32 0.03125, %v53_v4 }
  0x93   :  { %v60_v6 = vsub.f32 %v1877_v0, %v58_v5 }
  0x94   :  { %v56_v7 = vpop.xlane.xlu0 %55 }
  0x95   :  { %v59_v8 = vmul.f32 0.03125, %v56_v7  ;;  %v62_v9 = vmul.f32 %v60_v6, %v60_v6 }
  0x97   :  { %v61_v10 = vsub.f32 %v1882_v1, %v59_v8  ;;  %v64_v11 = vsel %vm50_vm0, %v62_v9, 0.0 }
  0x98   :  { %65 = vadd.xlane.f32.xlu1 %v64_v11 }
  0x99   :  { %v63_v12 = vmul.f32 %v61_v10, %v61_v10 }
  0x9b   :  { %v67_v13 = vsel %vm50_vm0, %v63_v12, 0.0 }
  0x9c   :  { %68 = vadd.xlane.f32.xlu1 %v67_v13 }
 0x125   :  { %v66_v17 = vpop.xlane.xlu1 %65 }
 0x126   :  { %v70_v18 = vmul.f32 0.03125, %v66_v17  ;;  %v191_v17 = vshrl.u32 %v190_v16, 7 }
 0x128   :  { %v72_v19 = vadd.f32 1e-05, %v70_v18  ;;  %v193_v18 = vand.u32 127, %v190_v16 }
 0x129   :  { %v69_v20 = vpop.xlane.xlu1 %68 }
 0x12a   :  { %1723 = vrsqrt.f32 %v72_v19  ;;  %v71_v21 = vmul.f32 0.03125, %v69_v20  ;;  %vm194_vm4 = vcmp.le.s32.totalorder %v193_v18, %v191_v17  ;;  %v1798_v19 = vmov -1e+30  }
 0x12b   :  { %v195_v20 = vsel %vm194_vm4, 0.0, %v1798_v19 }
 0x12c   :  { %v73_v22 = vadd.f32 1e-05, %v71_v21 }
 0x12e   :  { %1725 = vrsqrt.f32 %v73_v22 }
 0x134   :  { %v1724_v23 = vpop.eup %1723 }
 0x135   :  { %v76_v24 = vmul.f32 %v1724_v23, %v60_v6 }
 0x137   :  { %v84_v28 = vmul.f32 %v1435_v25, %v76_v24 }
 0x138   :  { %v1726_v26 = vpop.eup %1725 }
 0x139   :  { %v77_v27 = vmul.f32 %v1726_v26, %v61_v10  ;;  %v92_v31 = vadd.f32 %v1436_v29, %v84_v28 }
 0x13b   :  { %v85_v30 = vmul.f32 %v1435_v25, %v77_v27 }
 0x13d   :  { %v93_v32 = vadd.f32 %v1436_v29, %v85_v30 }
 0x13f   :  { %v94_v33 = vpack.c.bf16 %v93_v32, %v92_v31 }
 0x141   :  { %1531 = vmatmul.mubr.msk.bf16.vlgmr.msra.gmra.mrb[0].mxu0 %vm50_vm0, %v94_v33 }
 0x142   :  { %1536 = vmatprep.mubr.msk.bf16.mxu0 %vm1792_vm1, %v1791_v15 }
 0x214   :  { %v155_v35 = vpop.f32.mrb[0].mxu0 }
 0x215   :  { %v1532_v36 = vpop.f32.mrb[1].mxu0  ;;  %v156_v38 = vadd.f32 %v1437_v34, %v155_v35 }
 0x216   :  { %v158_v37 = vpop.f32.mrb[2].mxu0 }
 0x217   :  { %v159_v39 = vadd.f32 %v1437_v34, %v158_v37  ;;  %v1533_v40 = vpop.f32.mrb[3].mxu0  ;;  %v182_v43 = vpack.c.bf16 %v156_v38, %v156_v38 }
 0x219   :  { %v1684_v41 = vpack.i.bf16 %v159_v39, %v156_v38  ;;  %v1918_v42 = vpack.c.bf16 %v159_v39, %v159_v39 }
 0x21b   :  { %1685 = vrot.lane.b32.xlu1 %v1684_v41, %s1793_s1  ;;  %1680 = vrot.lane.b32.xlu0 %v1684_v41, %s1794_s2 }
 0x21f   :  { %1690 = vrot.lane.b32.xlu1 %v1684_v41, %s1795_s20  ;;  %247 = vrot.lane.b32.xlu0 %v1918_v42, %s1796_s21 }
 0x223   :  { %197 = vrot.lane.b32.xlu1 %v182_v43, %s1796_s21 }
 0x28d   :  { %v1686_v44 = vpop.permute.xlu1 %1685  ;;  %v1681_v45 = vpop.permute.xlu0 %1680 }
 0x28e   :  { %v1683_v46 = vunpack.i.h.bf16 %v1681_v45  ;;  %v1682_v47 = vunpack.i.l.bf16 %v1681_v45  ;;  %v1688_v48 = vunpack.i.h.bf16 %v1686_v44  ;;  %v1687_v49 = vunpack.i.l.bf16 %v1686_v44 }
 0x290   :  { %v1921_v50 = vpack.c.bf16 %v1683_v46, %v1683_v46  ;;  %v1923_v51 = vpack.c.bf16 %v1682_v47, %v1682_v47  ;;  %v1927_v53 = vpack.c.bf16 %v1688_v48, %v1688_v48  ;;  %v1929_v54 = vpack.c.bf16 %v1687_v49, %v1687_v49 }
 0x291   :  { %v1691_v52 = vpop.permute.xlu1 %1690  ;;  %v248_v61 = vpop.permute.xlu0 %247 }
 0x292   :  { %296 = vrot.lane.b32.xlu1 %v1923_v51, %s1796_s21  ;;  %345 = vrot.lane.b32.xlu0 %v1921_v50, %s1796_s21  ;;  %v1693_v55 = vunpack.i.h.bf16 %v1691_v52  ;;  %v1692_v56 = vunpack.i.l.bf16 %v1691_v52  ;;  %v253_v62 = vsel %vm199_vm2, %v248_v61, 0 }
 0x294   :  { %v1934_v59 = vpack.c.bf16 %v1693_v55, %v1693_v55  ;;  %v1936_v60 = vpack.c.bf16 %v1692_v56, %v1692_v56 }
 0x295   :  { %v198_v57 = vpop.permute.xlu1 %197 }
 0x296   :  { %v204_v58 = vsel %vm199_vm2, %v198_v57, 0  ;;  %394 = vrot.lane.b32.xlu1 %v1929_v54, %s1796_s21  ;;  %443 = vrot.lane.b32.xlu0 %v1927_v53, %s1796_s21 }
 0x297   :  { %1535 = vmatpush3.bf16.xpose.msra.mxu0 %v204_v58 }
 0x298   :  { %1540 = vmatprep.subr.bf16.mxu0 %v1791_v15 }
 0x29a   :  { %492 = vrot.lane.b32.xlu1 %v1936_v60, %s1796_s21  ;;  %541 = vrot.lane.b32.xlu0 %v1934_v59, %s1796_s21 }
 0x29e   :  { %1537 = vmatmul.mubr.msk.bf16.vlgmr.msra.gmra.mrb[4].mxu0 %vm199_vm2, %v182_v43  ;;  %685 = vrot.lane.b32.xlu1 %v182_v43, %s1797_s4 }
 0x29f   :  { %1541 = vmatpush3.bf16.xpose.msra.mxu0 %v253_v62  ;;  %1542 = vmatprep.mubr.msk.bf16.mxu0 %vm1792_vm1, %v1791_v15 }
 0x2a0   :  { %1552 = vmatprep.subr.bf16.mxu0 %v1791_v15 }
 0x2a6   :  { %1543 = vmatmul.mubr.msk.bf16.vlgmr.msra.gmra.mrb[8].mxu0 %vm199_vm2, %v1918_v42 }
 0x2a7   :  { %1554 = vmatprep.mubr.msk.bf16.mxu0 %vm1792_vm1, %v1791_v15 }
 0x304   :  { %v297_v63 = vpop.permute.xlu1 %296  ;;  %v346_v2 = vpop.permute.xlu0 %345 }
 0x305   :  { %v351_v3 = vsel %vm199_vm2, %v346_v2, 0  ;;  %v302_v4 = vsel %vm199_vm2, %v297_v63, 0 }
 0x306   :  { %1547 = vmatpush3.bf16.xpose.msra.mxu1 %v302_v4  ;;  %1553 = vmatpush3.bf16.xpose.msra.mxu0 %v351_v3 }
 0x307   :  { %1558 = vmatprep.subr.bf16.mxu1 %v1791_v15  ;;  %1564 = vmatprep.subr.bf16.mxu0 %v1791_v15 }
 0x308   :  { %v395_v5 = vpop.permute.xlu1 %394  ;;  %v444_v6 = vpop.permute.xlu0 %443 }
 0x309   :  { %v400_v7 = vsel %vm199_vm2, %v395_v5, 0  ;;  %v449_v8 = vsel %vm199_vm2, %v444_v6, 0 }
 0x30c   :  { %v493_v9 = vpop.permute.xlu1 %492  ;;  %v542_v10 = vpop.permute.xlu0 %541 }
 0x30d   :  { %1549 = vmatmul.mubr.msk.bf16.vlgmr.msra.gmra.mrb[0].mxu1 %vm199_vm2, %v1923_v51  ;;  %1555 = vmatmul.mubr.msk.bf16.vlgmr.msra.gmra.mrb[12].mxu0 %vm199_vm2, %v1921_v50  ;;  %v498_v11 = vsel %vm199_vm2, %v493_v9, 0  ;;  %v547_v12 = vsel %vm199_vm2, %v542_v10, 0 }
 0x30e   :  { %1559 = vmatpush3.bf16.xpose.msra.mxu1 %v400_v7  ;;  %1565 = vmatpush3.bf16.xpose.msra.mxu0 %v449_v8 }
 0x30f   :  { %1560 = vmatprep.mubr.msk.bf16.mxu1 %vm1792_vm1, %v1791_v15  ;;  %1566 = vmatprep.mubr.msk.bf16.mxu0 %vm1792_vm1, %v1791_v15 }
 0x310   :  { %1570 = vmatprep.subr.bf16.mxu1 %v1791_v15  ;;  %1576 = vmatprep.subr.bf16.mxu0 %v1791_v15  ;;  %v686_v13 = vpop.permute.xlu1 %685 }
 0x311   :  { %v692_v14 = vsel %vm690_vm3, %v686_v13, 0 }
 0x315   :  { %1561 = vmatmul.mubr.msk.bf16.vlgmr.msra.gmra.mrb[4].mxu1 %vm199_vm2, %v1929_v54  ;;  %1567 = vmatmul.mubr.msk.bf16.vlgmr.msra.gmra.mrb[16].mxu0 %vm199_vm2, %v1927_v53 }
 0x316   :  { %1571 = vmatpush3.bf16.xpose.msra.mxu1 %v498_v11  ;;  %1577 = vmatpush3.bf16.xpose.msra.mxu0 %v547_v12 }
 0x317   :  { %1572 = vmatprep.mubr.msk.bf16.mxu1 %vm1792_vm1, %v1791_v15  ;;  %1578 = vmatprep.mubr.msk.bf16.mxu0 %vm1792_vm1, %v1791_v15 }
 0x318   :  { %1582 = vmatprep.subr.bf16.mxu1 %v1791_v15  ;;  %1588 = vmatprep.subr.bf16.mxu0 %v1791_v15 }
 0x31d   :  { %1573 = vmatmul.mubr.msk.bf16.vlgmr.msra.gmra.mrb[8].mxu1 %vm199_vm2, %v1936_v60  ;;  %1579 = vmatmul.mubr.msk.bf16.vlgmr.msra.gmra.mrb[20].mxu0 %vm199_vm2, %v1934_v59 }
 0x31e   :  { %1583 = vmatpush3.bf16.msra.mxu1 %v692_v14  ;;  %1590 = vmatprep.mubr.msk.bf16.mxu0 %vm1792_vm1, %v1791_v15 }
 0x31f   :  { %1584 = vmatprep.mubr.msk.bf16.mxu1 %vm1792_vm1, %v1791_v15  ;;  %1594 = vmatprep.subr.bf16.mxu1 %v1791_v15 }
 0x371   :  { %v240_v21 = vpop.f32.mrb[4].mxu0 }
 0x372   :  { %v1989_v22 = vadd.f32 %v240_v21, %v195_v20  ;;  %v1538_v23 = vpop.f32.mrb[5].mxu0 }
 0x373   :  { %v243_v24 = vpop.f32.mrb[6].mxu0 }
 0x374   :  { %v1539_v25 = vpop.f32.mrb[7].mxu0  ;;  %v589_v26 = vsel %vm199_vm2, %v1989_v22, -inf }
 0x375   :  { %590 = vmax.xlane.f32.xlu1 %v589_v26 }
 0x379   :  { %v289_v27 = vpop.f32.mrb[8].mxu0 }
 0x37a   :  { %v290_v28 = vadd.f32 %v289_v27, %v195_v20  ;;  %v1544_v29 = vpop.f32.mrb[9].mxu0 }
 0x37b   :  { %v292_v30 = vpop.f32.mrb[10].mxu0 }
 0x37c   :  { %v1545_v31 = vpop.f32.mrb[11].mxu0  ;;  %v592_v32 = vsel %vm199_vm2, %v290_v28, -inf }
 0x37d   :  { %593 = vmax.xlane.f32.xlu0 %v592_v32 }
 0x3e0   :  { %v338_v33 = vpop.f32.mrb[0].mxu1  ;;  %v387_v34 = vpop.f32.mrb[12].mxu0 }
 0x3e1   :  { %v339_v35 = vadd.f32 %v338_v33, %v195_v20  ;;  %v1550_v36 = vpop.f32.mrb[1].mxu1  ;;  %v1556_v37 = vpop.f32.mrb[13].mxu0  ;;  %v388_v40 = vadd.f32 %v387_v34, %v195_v20 }
 0x3e2   :  { %v341_v38 = vpop.f32.mrb[2].mxu1  ;;  %v390_v39 = vpop.f32.mrb[14].mxu0 }
 0x3e3   :  { %v1551_v41 = vpop.f32.mrb[3].mxu1  ;;  %v1557_v43 = vpop.f32.mrb[15].mxu0  ;;  %v595_v44 = vsel %vm199_vm2, %v339_v35, -inf  ;;  %v598_v45 = vsel %vm199_vm2, %v388_v40, -inf }
 0x3e4   :  { %596 = vmax.xlane.f32.xlu0 %v595_v44 }
 0x3e8   :  { %v436_v46 = vpop.f32.mrb[4].mxu1  ;;  %599 = vmax.xlane.f32.xlu0 %v598_v45  ;;  %v485_v47 = vpop.f32.mrb[16].mxu0 }
 0x3e9   :  { %v437_v48 = vadd.f32 %v436_v46, %v195_v20  ;;  %v1996_v49 = vadd.f32 %v485_v47, %v195_v20  ;;  %v1562_v52 = vpop.f32.mrb[5].mxu1  ;;  %v1568_v55 = vpop.f32.mrb[17].mxu0 }
 0x3ea   :  { %v439_v56 = vpop.f32.mrb[6].mxu1  ;;  %v488_v57 = vpop.f32.mrb[18].mxu0 }
 0x3eb   :  { %v1563_v58 = vpop.f32.mrb[7].mxu1  ;;  %v1569_v61 = vpop.f32.mrb[19].mxu0  ;;  %v601_v62 = vsel %vm199_vm2, %v437_v48, -inf  ;;  %v604_v63 = vsel %vm199_vm2, %v1996_v49, -inf }
 0x3ec   :  { %602 = vmax.xlane.f32.xlu1 %v601_v62  ;;  %605 = vmax.xlane.f32.xlu0 %v604_v63 }
 0x3f0   :  { %v534_v2 = vpop.f32.mrb[8].mxu1  ;;  %v583_v3 = vpop.f32.mrb[20].mxu0 }
 0x3f1   :  { %v535_v4 = vadd.f32 %v534_v2, %v195_v20  ;;  %v2001_v5 = vadd.f32 %v583_v3, %v195_v20  ;;  %v1574_v6 = vpop.f32.mrb[9].mxu1  ;;  %v1580_v7 = vpop.f32.mrb[21].mxu0 }
 0x3f2   :  { %v537_v8 = vpop.f32.mrb[10].mxu1  ;;  %v586_v9 = vpop.f32.mrb[22].mxu0 }
 0x3f3   :  { %v1575_v10 = vpop.f32.mrb[11].mxu1  ;;  %v1581_v11 = vpop.f32.mrb[23].mxu0  ;;  %v607_v12 = vsel %vm199_vm2, %v535_v4, -inf  ;;  %v610_v13 = vsel %vm199_vm2, %v2001_v5, -inf }
 0x3f4   :  { %608 = vmax.xlane.f32.xlu1 %v607_v12  ;;  %611 = vmax.xlane.f32.xlu0 %v610_v13 }
 0x402   :  { %v591_v17 = vpop.xlane.xlu1 %590 }
 0x403   :  { %v613_v18 = vsub.f32 %v1989_v22, %v591_v17 }
 0x405   :  { %782 = vrot.lane.b32.xlu1 %v1923_v51, %s1797_s4  ;;  %v621_v20 = vmul.f32 1.442695, %v613_v18 }
 0x409   :  { %830 = vrot.lane.b32.xlu1 %v1921_v50, %s1797_s4 }
 0x40a   :  { %734 = vrot.lane.b32.xlu0 %v1918_v42, %s1797_s4  ;;  %v594_v14 = vpop.xlane.xlu0 %593 }
 0x40b   :  { %v614_v16 = vsub.f32 %v290_v28, %v594_v14 }
 0x40d   :  { %v623_v19 = vmul.f32 1.442695, %v614_v16 }
 0x40f   :  { %1727 = vpow2.f32 %v623_v19 }
 0x410   :  { %1729 = vpow2.f32 %v621_v20 }
 0x419   :  { %v1728_v21 = vpop.eup %1727 }
 0x41a   :  { %v640_v23 = vsel %vm199_vm2, %v1728_v21, 0.0  ;;  %v2014_v24 = vpop.eup %1729 }
 0x41b   :  { %v637_v50 = vsel %vm199_vm2, %v2014_v24, 0.0 }
 0x429   :  { %641 = vadd.xlane.f32.xlu0 %v640_v23 }
 0x42d   :  { %638 = vadd.xlane.f32.xlu1 %v637_v50 }
 0x43e   :  { %878 = vrot.lane.b32.xlu1 %v1929_v54, %s1797_s4 }
 0x471   :  { %v597_v42 = vpop.xlane.xlu0 %596 }
 0x472   :  { %v615_v51 = vsub.f32 %v339_v35, %v597_v42 }
 0x474   :  { %v625_v22 = vmul.f32 1.442695, %v615_v51 }
 0x475   :  { %v600_v25 = vpop.xlane.xlu0 %599 }
 0x476   :  { %1731 = vpow2.f32 %v625_v22  ;;  %v616_v26 = vsub.f32 %v388_v40, %v600_v25 }
 0x478   :  { %v627_v27 = vmul.f32 1.442695, %v616_v26 }
 0x479   :  { %v603_v28 = vpop.xlane.xlu1 %602  ;;  %v606_v31 = vpop.xlane.xlu0 %605 }
 0x47a   :  { %1733 = vpow2.f32 %v627_v27  ;;  %v617_v29 = vsub.f32 %v437_v48, %v603_v28  ;;  %v618_v46 = vsub.f32 %v1996_v49, %v606_v31 }
 0x47c   :  { %v629_v30 = vmul.f32 1.442695, %v617_v29  ;;  %v631_v47 = vmul.f32 1.442695, %v618_v46 }
 0x47e   :  { %1735 = vpow2.f32 %v629_v30 }
 0x480   :  { %v2020_v32 = vpop.eup %1731 }
 0x481   :  { %v609_v33 = vpop.xlane.xlu1 %608  ;;  %v612_v34 = vpop.xlane.xlu0 %611  ;;  %v643_v54 = vsel %vm199_vm2, %v2020_v32, 0.0 }
 0x482   :  { %v619_v36 = vsub.f32 %v535_v4, %v609_v33  ;;  %644 = vadd.xlane.f32.xlu1 %v643_v54  ;;  %v620_v48 = vsub.f32 %v2001_v5, %v612_v34 }
 0x484   :  { %v2024_v35 = vpop.eup %1733  ;;  %v633_v37 = vmul.f32 1.442695, %v619_v36  ;;  %v635_v52 = vmul.f32 1.442695, %v620_v48 }
 0x485   :  { %v735_v38 = vpop.permute.xlu0 %734  ;;  %v646_v39 = vsel %vm199_vm2, %v2024_v35, 0.0  ;;  %v783_v55 = vpop.permute.xlu1 %782 }
 0x486   :  { %1737 = vpow2.f32 %v633_v37  ;;  %v740_v40 = vsel %vm690_vm3, %v735_v38, 0  ;;  %647 = vadd.xlane.f32.xlu0 %v646_v39  ;;  %v788_v7 = vsel %vm690_vm3, %v783_v55, 0 }
 0x487   :  { %1589 = vmatpush3.bf16.msra.mxu0 %v740_v40  ;;  %1739 = vpow2.f32 %v631_v47 }
 0x488   :  { %v2029_v41 = vpop.eup %1735  ;;  %1600 = vmatprep.subr.bf16.mxu0 %v1791_v15  ;;  %1741 = vpow2.f32 %v635_v52 }
 0x489   :  { %v649_v43 = vsel %vm199_vm2, %v2029_v41, 0.0  ;;  %v831_v56 = vpop.permute.xlu1 %830 }
 0x48a   :  { %650 = vadd.xlane.f32.xlu1 %v649_v43  ;;  %v836_v4 = vsel %vm690_vm3, %v831_v56, 0 }
 0x490   :  { %v2034_v44 = vpop.eup %1737 }
 0x491   :  { %v655_v45 = vsel %vm199_vm2, %v2034_v44, 0.0  ;;  %v2044_v58 = vpop.eup %1739 }
 0x492   :  { %656 = vadd.xlane.f32.xlu1 %v655_v45  ;;  %v2048_v62 = vpop.eup %1741 }
 0x49c   :  { %926 = vrot.lane.b32.xlu0 %v1927_v53, %s1797_s4  ;;  %v652_v53 = vsel %vm199_vm2, %v2044_v58, 0.0 }
 0x4a3   :  { %974 = vrot.lane.b32.xlu1 %v1936_v60, %s1797_s4  ;;  %v658_v60 = vsel %vm199_vm2, %v2048_v62, 0.0 }
 0x4b6   :  { %v642_v57 = vpop.xlane.xlu0 %641 }
 0x4b7   :  { %1743 = vrcp.f32 %v642_v57 }
 0x4ba   :  { %v639_v61 = vpop.xlane.xlu1 %638 }
 0x4bb   :  { %1745 = vrcp.f32 %v639_v61  ;;  %653 = vadd.xlane.f32.xlu0 %v652_v53 }
 0x4be   :  { %v879_v8 = vpop.permute.xlu1 %878 }
 0x4bf   :  { %659 = vadd.xlane.f32.xlu0 %v658_v60  ;;  %v884_v17 = vsel %vm690_vm3, %v879_v8, 0 }
 0x4c1   :  { %v1744_v49 = vpop.eup %1743 }
 0x4c2   :  { %v670_v63 = vmul.f32 %v1744_v49, %v1728_v21 }
 0x4c4   :  { %v678_v2 = vpack.c.bf16 %v670_v63, %v670_v63 }
 0x4c5   :  { %v1746_v3 = vpop.eup %1745 }
 0x4c6   :  { %v669_v5 = vmul.f32 %v1746_v3, %v2014_v24  ;;  %1591 = vmatmul.mubr.msk.bf16.vlgmr.msra.gmra.mrb[24].mxu0 %vm199_vm2, %v678_v2 }
 0x4c7   :  { %1601 = vmatpush3.bf16.msra.mxu0 %v836_v4  ;;  %1602 = vmatprep.mubr.msk.bf16.mxu0 %vm1792_vm1, %v1791_v15  ;;  %v1711_v4 = vld [vmem:[%s2201_s5] sm:$0xff]  }
 0x4c8   :  { %v677_v6 = vpack.c.bf16 %v669_v5, %v669_v5  ;;  %1612 = vmatprep.subr.bf16.mxu0 %v1791_v15  ;;  %v1712_v5 = vld [vmem:[%s2201_s5 + $0x8] sm:$0xff]  }
 0x4ca   :  { %1585 = vmatmul.mubr.msk.bf16.vlgmr.msra.gmra.mrb[12].mxu1 %vm199_vm2, %v677_v6 }
 0x4cb   :  { %1595 = vmatpush3.bf16.msra.mxu1 %v788_v7  ;;  %1596 = vmatprep.mubr.msk.bf16.mxu1 %vm1792_vm1, %v1791_v15 }
 0x4cc   :  { %1606 = vmatprep.subr.bf16.mxu1 %v1791_v15 }
 0x4d5   :  { %1022 = vrot.lane.b32.xlu0 %v1934_v59, %s1797_s4 }
 0x50f   :  { %v645_v9 = vpop.xlane.xlu1 %644 }
 0x510   :  { %1747 = vrcp.f32 %v645_v9 }
 0x513   :  { %v648_v10 = vpop.xlane.xlu0 %647 }
 0x514   :  { %1749 = vrcp.f32 %v648_v10 }
 0x517   :  { %v651_v11 = vpop.xlane.xlu1 %650  ;;  %v927_v59 = vpop.permute.xlu0 %926 }
 0x518   :  { %1751 = vrcp.f32 %v651_v11  ;;  %v932_v24 = vsel %vm690_vm3, %v927_v59, 0 }
 0x51a   :  { %v1748_v12 = vpop.eup %1747 }
 0x51b   :  { %v671_v13 = vmul.f32 %v1748_v12, %v2020_v32 }
 0x51d   :  { %v679_v14 = vpack.c.bf16 %v671_v13, %v671_v13 }
 0x51e   :  { %v1750_v16 = vpop.eup %1749 }
 0x51f   :  { %v672_v18 = vmul.f32 %v1750_v16, %v2024_v35  ;;  %1597 = vmatmul.mubr.msk.bf16.vlgmr.msra.gmra.mrb[16].mxu1 %vm199_vm2, %v679_v14  ;;  %v657_v19 = vpop.xlane.xlu1 %656 }
 0x520   :  { %1607 = vmatpush3.bf16.msra.mxu1 %v884_v17  ;;  %1753 = vrcp.f32 %v657_v19  ;;  %1608 = vmatprep.mubr.msk.bf16.mxu1 %vm1792_vm1, %v1791_v15 }
 0x521   :  { %v680_v20 = vpack.c.bf16 %v672_v18, %v672_v18  ;;  %1618 = vmatprep.subr.bf16.mxu1 %v1791_v15 }
 0x522   :  { %v1752_v21 = vpop.eup %1751 }
 0x523   :  { %v673_v23 = vmul.f32 %v1752_v21, %v2029_v41  ;;  %1603 = vmatmul.mubr.msk.bf16.vlgmr.msra.gmra.mrb[28].mxu0 %vm199_vm2, %v680_v20  ;;  %v975_v50 = vpop.permute.xlu1 %974 }
 0x524   :  { %1613 = vmatpush3.bf16.msra.mxu0 %v932_v24  ;;  %1614 = vmatprep.mubr.msk.bf16.mxu0 %vm1792_vm1, %v1791_v15  ;;  %v980_v51 = vsel %vm690_vm3, %v975_v50, 0 }
 0x525   :  { %v681_v42 = vpack.c.bf16 %v673_v23, %v673_v23  ;;  %1624 = vmatprep.subr.bf16.mxu0 %v1791_v15 }
 0x527   :  { %1609 = vmatmul.mubr.msk.bf16.vlgmr.msra.gmra.mrb[20].mxu1 %vm199_vm2, %v681_v42 }
 0x528   :  { %1619 = vmatpush3.bf16.msra.mxu1 %v980_v51  ;;  %1620 = vmatprep.mubr.msk.bf16.mxu1 %vm1792_vm1, %v1791_v15 }
 0x529   :  { %1630 = vmatprep.subr.bf16.mxu1 %v1791_v15 }
 0x52a   :  { %v1754_v22 = vpop.eup %1753 }
 0x52b   :  { %v675_v25 = vmul.f32 %v1754_v22, %v2034_v44 }
 0x52d   :  { %v683_v26 = vpack.c.bf16 %v675_v25, %v675_v25 }
 0x52f   :  { %1621 = vmatmul.mubr.msk.bf16.vlgmr.msra.gmra.mrb[24].mxu1 %vm199_vm2, %v683_v26 }
 0x530   :  { %1634 = vmatprep.mubr.msk.bf16.mxu1 %vm1792_vm1, %v1791_v15  ;;  %1631 = vmatpush3.bf16.msra.mxu1 %v1711_v4  ;;  %v1462_v4 = vld [vmem:[%s2204_s8] ss:$0 sm:$0xff] }
 0x531   :  { %1632 = vmatprep.subr.bf16.mxu1 %v1791_v15 }
 0x534   :  { %1633 = vmatpush3.bf16.msra.mxu1 %v1712_v5 }
 0x535   :  { %1646 = vmatprep.subr.bf16.mxu1 %v1791_v15 }
 0x548   :  { %v654_v27 = vpop.xlane.xlu0 %653 }
 0x549   :  { %1755 = vrcp.f32 %v654_v27 }
 0x54c   :  { %v660_v28 = vpop.xlane.xlu0 %659 }
 0x54d   :  { %1757 = vrcp.f32 %v660_v28 }
 0x550   :  { %v1023_v31 = vpop.permute.xlu0 %1022 }
 0x551   :  { %v1028_v34 = vsel %vm690_vm3, %v1023_v31, 0 }
 0x553   :  { %v1756_v29 = vpop.eup %1755 }
 0x554   :  { %v674_v30 = vmul.f32 %v1756_v29, %v2044_v58  ;;  %v1457_v29 = vld [vmem:[%s2202_s6] ss:$0 sm:$0xff]  ;;  %s1802_s6 = smov [#allocation2]  }
 0x555   :  { %s1424_s29 = sshll.u32 %s1802_s6, 4  ;;  %s1425_s29 = int_to_ptr.vmem [resolvable:$true] %s1424_s29 }
 0x556   :  { %v682_v32 = vpack.c.bf16 %v674_v30, %v674_v30  ;;  %s1767_s30 = scalar_lea.vmem %s1425_s29, 256  ;;  %p1772_p1 = scmp.lt.s32.totalorder %s1425_s29, %s1425_s29 }
 0x557   :  { %v1758_v33 = vpop.eup %1757  ;;  %p1768_p0 = scmp.ne.s32.totalorder %s1425_s29, %s1767_s30  ;;  %p1773_p2 = scmp.lt.s32.totalorder %s1767_s30, %s1767_s30 }
 0x558   :  { %1615 = vmatmul.mubr.msk.bf16.vlgmr.msra.gmra.mrb[32].mxu0 %vm199_vm2, %v682_v32  ;;  %v676_v54 = vmul.f32 %v1758_v33, %v2048_v62 }
 0x559   :  { %1625 = vmatpush3.bf16.msra.mxu0 %v1028_v34  ;;  %1626 = vmatprep.mubr.msk.bf16.mxu0 %vm1792_vm1, %v1791_v15  ;;  %p1774_p3 = por %p1773_p2, %p1772_p1 }
 0x55a   :  { %1638 = vmatprep.subr.bf16.mxu0 %v1791_v15  ;;  %v684_v36 = vpack.c.bf16 %v676_v54, %v676_v54 }
 0x55b   :  { %p1775_p4 = pnand %p1774_p3, %p1768_p0 }
 0x560   :  { %1627 = vmatmul.mubr.msk.bf16.vlgmr.msra.gmra.mrb[36].mxu0 %vm199_vm2, %v684_v36 }
 0x561   :  { %1642 = vmatprep.mubr.msk.bf16.mxu0 %vm1792_vm1, %v1791_v15 }
 0x599   :  { %v776_v35 = vpop.f32.mrb[24].mxu0 }
 0x59a   :  { %v1592_v37 = vpop.f32.mrb[25].mxu0 }
 0x59b   :  { %v779_v38 = vpop.f32.mrb[26].mxu0 }
 0x59c   :  { %v1593_v39 = vpop.f32.mrb[27].mxu0 }
 0x59d   :  { %v728_v40 = vpop.f32.mrb[12].mxu1 }
 0x59e   :  { %v1586_v41 = vpop.f32.mrb[13].mxu1 }
 0x59f   :  { %v731_v43 = vpop.f32.mrb[14].mxu1 }
 0x5a0   :  { %v1587_v44 = vpop.f32.mrb[15].mxu1 }
 0x5f2   :  { %v824_v45 = vpop.f32.mrb[16].mxu1 }
 0x5f3   :  { %v1598_v46 = vpop.f32.mrb[17].mxu1 }
 0x5f4   :  { %v827_v47 = vpop.f32.mrb[18].mxu1 }
 0x5f5   :  { %v1599_v48 = vpop.f32.mrb[19].mxu1 }
 0x5f6   :  { %v872_v52 = vpop.f32.mrb[28].mxu0  ;;  %v1713_v48 = vld [vmem:[%s2205_s9] sm:$0xff]  }
 0x5f7   :  { %v1694_v55 = vpack.i.bf16 %v872_v52, %v824_v45  ;;  %v1604_v56 = vpop.f32.mrb[29].mxu0  ;;  %1639 = vmatpush3.bf16.msra.mxu0 %v1713_v48  ;;  %v1714_v52 = vld [vmem:[%s2205_s9 + $0x8] sm:$0xff]  }
 0x5f8   :  { %v875_v57 = vpop.f32.mrb[30].mxu0  ;;  %1640 = vmatprep.subr.bf16.mxu0 %v1791_v15 }
 0x5f9   :  { %1695 = vrot.lane.b32.xlu1 %v1694_v55, %s1799_s22  ;;  %v1605_v58 = vpop.f32.mrb[31].mxu0 }
 0x5fa   :  { %v920_v61 = vpop.f32.mrb[20].mxu1 }
 0x5fb   :  { %v1610_v53 = vpop.f32.mrb[21].mxu1  ;;  %1641 = vmatpush3.bf16.msra.mxu0 %v1714_v52 }
 0x5fc   :  { %v923_v62 = vpop.f32.mrb[22].mxu1 }
 0x5fd   :  { %v1611_v60 = vpop.f32.mrb[23].mxu1 }
 0x602   :  { %v1016_v49 = vpop.f32.mrb[24].mxu1 }
 0x603   :  { %v1622_v63 = vpop.f32.mrb[25].mxu1 }
 0x604   :  { %v1019_v2 = vpop.f32.mrb[26].mxu1 }
 0x605   :  { %v1623_v3 = vpop.f32.mrb[27].mxu1 }
 0x62b   :  { %v968_v6 = vpop.f32.mrb[32].mxu0 }
 0x62c   :  { %v1699_v7 = vpack.i.bf16 %v968_v6, %v920_v61  ;;  %v1616_v8 = vpop.f32.mrb[33].mxu0 }
 0x62d   :  { %v971_v9 = vpop.f32.mrb[34].mxu0 }
 0x62e   :  { %1700 = vrot.lane.b32.xlu0 %v1699_v7, %s1800_s27  ;;  %v1617_v10 = vpop.f32.mrb[35].mxu0  ;;  %v1715_v9 = vld [vmem:[%s2207_s11] sm:$0xff]  }
 0x62f   :  { %v1716_v10 = vld [vmem:[%s2207_s11 + $0x8] sm:$0xff]  }
 0x633   :  { %v1064_v11 = vpop.f32.mrb[36].mxu0 }
 0x634   :  { %v1704_v12 = vpack.i.bf16 %v1064_v11, %v1016_v49  ;;  %v1628_v13 = vpop.f32.mrb[37].mxu0  ;;  %v1461_v49 = vld [vmem:[%s2203_s7] ss:$0 sm:$0xff]  ;;  %v1717_v11 = vld [vmem:[%s2207_s11 + $0x10] sm:$0xff]  }
 0x635   :  { %v1067_v14 = vpop.f32.mrb[38].mxu0  ;;  %v1719_v13 = vld [vmem:[%s2207_s11 + $0x20] sm:$0xff]  }
 0x636   :  { %1705 = vrot.lane.b32.xlu1 %v1704_v12, %s1801_s28  ;;  %v1629_v16 = vpop.f32.mrb[39].mxu0  ;;  %v1718_v12 = vld [vmem:[%s2207_s11 + $0x18] sm:$0xff]   ;;  %v1720_v14 = vld [vmem:[%s2207_s11 + $0x28] sm:$0xff]  }
 0x637   :  { %v1721_v16 = vld [vmem:[%s2207_s11 + $0x30] sm:$0xff]  }
 0x66b   :  { %v1696_v17 = vpop.permute.xlu1 %1695 }
 0x66c   :  { %v1698_v19 = vunpack.i.h.bf16 %v1696_v17  ;;  %v1697_v59 = vunpack.i.l.bf16 %v1696_v17  ;;  %v1722_v17 = vld [vmem:[%s2207_s11 + $0x38] sm:$0xff]  }
 0x66e   :  { %v1095_v24 = vsel %vm199_vm2, %v776_v35, %v1698_v19  ;;  %v1094_v50 = vsel %vm199_vm2, %v728_v40, %v1697_v59 }
 0x6a0   :  { %v1701_v18 = vpop.permute.xlu0 %1700 }
 0x6a1   :  { %v1703_v20 = vunpack.i.h.bf16 %v1701_v18  ;;  %v1702_v21 = vunpack.i.l.bf16 %v1701_v18  ;;  %v1463_v18 = vld [vmem:[%s2206_s10] ss:$0 sm:$0xff] }
 0x6a3   :  { %v1098_v22 = vsel %vm1096_vm5, %v1095_v24, %v1703_v20  ;;  %v1097_v25 = vsel %vm1096_vm5, %v1094_v50, %v1702_v21 }
 0x6a8   :  { %v1706_v23 = vpop.permute.xlu1 %1705 }
 0x6a9   :  { %v1708_v42 = vunpack.i.h.bf16 %v1706_v23  ;;  %v1707_v51 = vunpack.i.l.bf16 %v1706_v23 }
 0x6ab   :  { %v1101_v26 = vsel %vm1099_vm6, %v1098_v22, %v1708_v42  ;;  %v1100_v27 = vsel %vm1099_vm6, %v1097_v25, %v1707_v51 }
 0x6ac   :  { %v1102_v28 = vpack.c.bf16 %v1101_v26, %v1100_v27 }
 0x6ae   :  { %1635 = vmatmul.mubr.msk.bf16.vlgmr.msra.gmra.mrb[28].mxu1 %vm50_vm0, %v1102_v28 }
 0x6af   :  { %1662 = vmatprep.mubr.msk.bf16.mxu1 %vm1792_vm1, %v1791_v15  ;;  %1647 = vmatpush3.bf16.msra.mxu1 %v1715_v9 }
 0x6b0   :  { %1648 = vmatprep.subr.bf16.mxu1 %v1791_v15 }
 0x6b3   :  { %1649 = vmatpush3.bf16.msra.mxu1 %v1716_v10 }
 0x6b4   :  { %1650 = vmatprep.subr.bf16.mxu1 %v1791_v15 }
 0x6b7   :  { %1651 = vmatpush3.bf16.msra.mxu1 %v1717_v11 }
 0x6b8   :  { %1652 = vmatprep.subr.bf16.mxu1 %v1791_v15 }
 0x6bb   :  { %1653 = vmatpush3.bf16.msra.mxu1 %v1718_v12 }
 0x6bc   :  { %1654 = vmatprep.subr.bf16.mxu1 %v1791_v15 }
 0x6bf   :  { %1655 = vmatpush3.bf16.msra.mxu1 %v1719_v13 }
 0x6c0   :  { %1656 = vmatprep.subr.bf16.mxu1 %v1791_v15 }
 0x6c3   :  { %1657 = vmatpush3.bf16.msra.mxu1 %v1720_v14 }
 0x6c4   :  { %1658 = vmatprep.subr.bf16.mxu1 %v1791_v15 }
 0x6c7   :  { %1659 = vmatpush3.bf16.msra.mxu1 %v1721_v16 }
 0x6c8   :  { %1660 = vmatprep.subr.bf16.mxu1 %v1791_v15 }
 0x6cb   :  { %1661 = vmatpush3.bf16.msra.mxu1 %v1722_v17 }
 0x781   :  { %v1163_v30 = vpop.f32.mrb[28].mxu1 }
 0x782   :  { %v1164_v31 = vadd.f32 %v1457_v29, %v1163_v30  ;;  %v1636_v32 = vpop.f32.mrb[29].mxu1 }
 0x783   :  { %v1166_v33 = vpop.f32.mrb[30].mxu1 }
 0x784   :  { %v2115_v34 = vadd.f32 %v1164_v31, %v1877_v0  ;;  %v1167_v54 = vadd.f32 %v1457_v29, %v1166_v33  ;;  %v1637_v36 = vpop.f32.mrb[31].mxu1 }
 0x786   :  { %v2118_v35 = vadd.f32 %v1167_v54, %v1882_v1  ;;  %v1174_v37 = vsel %vm50_vm0, %v2115_v34, 0.0 }
 0x787   :  { %1175 = vadd.xlane.f32.xlu0 %v1174_v37 }
 0x788   :  { %v1177_v38 = vsel %vm50_vm0, %v2118_v35, 0.0 }
 0x789   :  { %1178 = vadd.xlane.f32.xlu1 %v1177_v38 }
 0x814   :  { %v1176_v39 = vpop.xlane.xlu0 %1175 }
 0x815   :  { %v1180_v40 = vmul.f32 0.03125, %v1176_v39 }
 0x816   :  { %v1179_v41 = vpop.xlane.xlu1 %1178 }
 0x817   :  { %v1182_v43 = vsub.f32 %v2115_v34, %v1180_v40  ;;  %v1181_v0 = vmul.f32 0.03125, %v1179_v41  ;;  %v1467_v40 = vld [vmem:[%s2208_s12] ss:$0 sm:$0xff] }
 0x819   :  { %v1183_v44 = vsub.f32 %v2118_v35, %v1181_v0  ;;  %v1184_v45 = vmul.f32 %v1182_v43, %v1182_v43 }
 0x81b   :  { %v1186_v1 = vsel %vm50_vm0, %v1184_v45, 0.0  ;;  %v1185_v46 = vmul.f32 %v1183_v44, %v1183_v44 }
 0x81c   :  { %1187 = vadd.xlane.f32.xlu0 %v1186_v1 }
 0x81d   :  { %v1189_v47 = vsel %vm50_vm0, %v1185_v46, 0.0 }
 0x820   :  { %1190 = vadd.xlane.f32.xlu0 %v1189_v47 }
 0x8a9   :  { %v1188_v55 = vpop.xlane.xlu0 %1187 }
 0x8aa   :  { %v1192_v56 = vmul.f32 0.03125, %v1188_v55 }
 0x8ac   :  { %v1194_v57 = vadd.f32 1e-05, %v1192_v56 }
 0x8ad   :  { %v1191_v58 = vpop.xlane.xlu0 %1190 }
 0x8ae   :  { %1759 = vrsqrt.f32 %v1194_v57  ;;  %v1193_v61 = vmul.f32 0.03125, %v1191_v58 }
 0x8b0   :  { %v1195_v53 = vadd.f32 1e-05, %v1193_v61 }
 0x8b2   :  { %1761 = vrsqrt.f32 %v1195_v53 }
 0x8b8   :  { %v1760_v62 = vpop.eup %1759 }
 0x8b9   :  { %v1198_v60 = vmul.f32 %v1760_v62, %v1182_v43 }
 0x8bb   :  { %v1206_v2 = vmul.f32 %v1461_v49, %v1198_v60 }
 0x8bc   :  { %v1762_v63 = vpop.eup %1761 }
 0x8bd   :  { %v1199_v3 = vmul.f32 %v1762_v63, %v1183_v44  ;;  %v1214_v6 = vadd.f32 %v1462_v4, %v1206_v2 }
 0x8bf   :  { %v1207_v5 = vmul.f32 %v1461_v49, %v1199_v3 }
 0x8c1   :  { %v1215_v7 = vadd.f32 %v1462_v4, %v1207_v5 }
 0x8c3   :  { %v1216_v8 = vpack.c.bf16 %v1215_v7, %v1214_v6 }
 0x8c5   :  { %1643 = vmatmul.mubr.msk.bf16.vlgmr.msra.gmra.mrb[40].mxu0 %vm50_vm0, %v1216_v8 }
 0x998   :  { %v1277_v19 = vpop.f32.mrb[40].mxu0 }
 0x999   :  { %v1278_v59 = vadd.f32 %v1463_v18, %v1277_v19  ;;  %v1644_v20 = vpop.f32.mrb[41].mxu0 }
 0x99a   :  { %v1280_v21 = vpop.f32.mrb[42].mxu0 }
 0x99b   :  { %v1286_v23 = vmul.f32 0.044715, %v1278_v59  ;;  %v1281_v24 = vadd.f32 %v1463_v18, %v1280_v21  ;;  %v1645_v50 = vpop.f32.mrb[43].mxu0  ;;  %v1284_v33 = vmul.f32 0.5, %v1278_v59 }
 0x99d   :  { %v1288_v42 = vmul.f32 %v1286_v23, %v1278_v59  ;;  %v1287_v51 = vmul.f32 0.044715, %v1281_v24  ;;  %v1285_v54 = vmul.f32 0.5, %v1281_v24 }
 0x99f   :  { %v1290_v22 = vmul.f32 %v1288_v42, %v1278_v59  ;;  %v1289_v25 = vmul.f32 %v1287_v51, %v1281_v24 }
 0x9a1   :  { %v1292_v26 = vadd.f32 %v1290_v22, %v1278_v59  ;;  %v1291_v27 = vmul.f32 %v1289_v25, %v1281_v24 }
 0x9a3   :  { %v1294_v28 = vmul.f32 0.7978846, %v1292_v26  ;;  %v1293_v15 = vadd.f32 %v1291_v27, %v1281_v24 }
 0x9a5   :  { %1763 = vtanh.f32 %v1294_v28  ;;  %v1295_v29 = vmul.f32 0.7978846, %v1293_v15 }
 0x9a7   :  { %1765 = vtanh.f32 %v1295_v29 }
 0x9af   :  { %v1764_v30 = vpop.eup %1763 }
 0x9b0   :  { %v1298_v31 = vadd.f32 1.0, %v1764_v30 }
 0x9b1   :  { %v1766_v32 = vpop.eup %1765 }
 0x9b2   :  { %v1299_v36 = vadd.f32 1.0, %v1766_v32  ;;  %v1300_v37 = vmul.f32 %v1298_v31, %v1284_v33 }
 0x9b4   :  { %v1301_v38 = vmul.f32 %v1299_v36, %v1285_v54 }
 0x9b6   :  { %v1302_v39 = vpack.c.bf16 %v1301_v38, %v1300_v37 }
 0x9b8   :  { %1663 = vmatmul.mubr.bf16.vlgmr.msra.gmra.mrb[32].mxu1 %v1302_v39 }
 0xa8b   :  { %v1408_v41 = vpop.f32.mrb[32].mxu1 }
 0xa8c   :  { %v1409_v43 = vadd.f32 %v1467_v40, %v1408_v41  ;;  %v1664_v0 = vpop.f32.mrb[33].mxu1 }
 0xa8d   :  { %v1411_v44 = vpop.f32.mrb[34].mxu1 }
 0xa8e   :  { %v1415_v45 = vadd.f32 %v1409_v43, %v2115_v34  ;;  %v1412_v1 = vadd.f32 %v1467_v40, %v1411_v44  ;;  %v1665_v46 = vpop.f32.mrb[35].mxu1 }
 0xa90   :  { %1417 = vst.msk [vmem:[#allocation2] sm:$0xff] %vm50_vm0, %v1415_v45  ;;  %v1416_v47 = vadd.f32 %v1412_v1, %v2118_v35 }
 0xa92   :  { %1418 = vst.msk [vmem:[#allocation2 + $0x8] sm:$0xff] %vm50_vm0, %v1416_v47 }
 0xa93   :  { %1778 = shalt.err (!%p1775_p4)
}
 0xa94   :  { %s1779_s3 = scalar_lea.hbm %s2209_s13, 256 }
 0xa95   :  { %p1780_p5 = scmp.ne.s32.totalorder %s2209_s13, %s1779_s3  ;;  %p1783_p6 = scmp.lt.u32.totalorder %s1779_s3, %s2209_s13 }
 0xa97   :  { %p1785_p7 = pnand %p1783_p6, %p1780_p5 }
 0xa99   :  { %1788 = shalt.err (!%p1785_p7)
}
 0xa9a   :  { %s1803_s18 = smov 128  }
 0xa9b   :  { %1430 = dma.vmem_to_hbm [thread:$0]  %s1425_s29, 256, %s2209_s13, [#allocation3], %s1803_s18, %s1803_s18, %s1799_s22  }
 0xa9c   :  { %1789 = dma.done.wait [#allocation3], 256  }
 0xa9d   :  { %1790 = vsyncadd [#allocation3], 4294967040 }
 0xa9e   :  { %1434 = vsyncpa [#allocation3], 1 }

</bundles_post_ra>
